<compile_context>
chip_gen: v5e
topology: v5e:2x2
jax: 0.10.0
libtpu: 0.0.40
codegen_flags: <defaults>
</compile_context>

<pallas_src>
import functools

import jax
import jax.numpy as jnp
from jax.experimental import pallas as pl
from jax.experimental.pallas import tpu as pltpu

_SMOOTH = 1e-05


def _dice_partials_kernel(score_ref, tgt_ref, out_i_ref, out_zy_ref, *,
                          apply_softmax, total_s, ragged_s, single_step):
    """Per-batch, per-class lane-partial sums.

    score_ref:  (C, tile_s, L) scores, native dtype (cast to f32 in-register)
    tgt_ref:    (1, tile_s, L) integer labels, native dtype
    out_i_ref:  (C, L) f32  sum over pixels of score * onehot        (intersect)
    out_zy_ref: (C, L) f32  sum over pixels of score^2 + onehot      (z_sum + y_sum)
    """
    n_classes, tile_s, lanes = score_ref.shape
    m = pl.program_id(1)

    if not single_step:
        @pl.when(m == 0)
        def _init():
            out_i_ref[...] = jnp.zeros_like(out_i_ref)
            out_zy_ref[...] = jnp.zeros_like(out_zy_ref)

    def accumulate(valid):
        s = score_ref[...].astype(jnp.float32)           # (C, tile_s, L)
        t = tgt_ref[0].astype(jnp.int32)                 # (tile_s, L)
        if valid is not None:
            s = jnp.where(valid[None], s, 0.0)           # zero garbage rows
        if apply_softmax:
            # softmax over the (leading) class axis: C-1 elementwise max/add.
            mx = s[0]
            for c in range(1, n_classes):
                mx = jnp.maximum(mx, s[c])
            e = jnp.exp(s - mx[None])
            denom = e[0]
            for c in range(1, n_classes):
                denom = denom + e[c]
            # Exact reciprocal of the (tile_s, L) denominator: C-fold less EUP
            # work than a full (C, tile_s, L) divide.
            s = e * pl.reciprocal(denom, approx=False)[None]
            if valid is not None:
                s = jnp.where(valid[None], s, 0.0)
        for c in range(n_classes):
            sc = s[c]                                     # (tile_s, L)
            hit = (t == c).astype(jnp.float32)            # onehot; onehot^2 == onehot
            if valid is not None:
                hit = jnp.where(valid, hit, 0.0)
            part_i = jnp.sum(sc * hit, axis=0, keepdims=True)         # (1, L)
            part_zy = jnp.sum(sc * sc + hit, axis=0, keepdims=True)   # (1, L)
            if single_step:
                out_i_ref[c:c + 1, :] = part_i
                out_zy_ref[c:c + 1, :] = part_zy
            else:
                out_i_ref[c:c + 1, :] += part_i
                out_zy_ref[c:c + 1, :] += part_zy

    if not ragged_s:
        accumulate(None)
    else:
        last = pl.num_programs(1) - 1

        @pl.when(m < last)
        def _body():                                      # hot path: no mask
            accumulate(None)

        @pl.when(m == last)
        def _tail():                                      # cold path: mask rows
            rows = jax.lax.broadcasted_iota(jnp.int32, (tile_s, lanes), 0)
            accumulate(m * tile_s + rows < total_s)


def _vmem_limit_bytes():
    """Generation-aware scoped-VMEM limit (v7x has half the VMEM of v5e/v6e)."""
    try:
        cap = int(pltpu.get_tpu_info().vmem_capacity_bytes)
    except Exception:
        cap = 64 << 20
    return int(min(cap * 3 // 4, 48 << 20))


def _choose_tile_s(n_classes, total_s, lanes, score_itemsize, tgt_itemsize,
                   budget_bytes):
    """Whole image in one block when it fits (no per-step overhead, no RMW);
    otherwise prefer a multiple-of-8 divisor of total_s (no tail masking)."""
    per_row = 2 * lanes * (n_classes * score_itemsize + tgt_itemsize)  # dbl-buffered
    max_s = max(8, int(budget_bytes // max(per_row, 1)))
    if total_s <= max_s:
        return total_s
    d = (max_s // 8) * 8
    while d >= 8:
        if total_s % d == 0:
            break
        d -= 8
    if d >= 8 and d * 4 >= max_s:          # clean divisor, not pathologically small
        return d
    return max(8, (max_s // 8) * 8)        # ragged: only the last tile is masked


def dice_loss_pallas(inputs, target, weight=None, softmax=False, tile_s=None):
    """inputs: (N, C, H, W) float (f32/bf16); target: (N, H, W) integer labels."""
    N, C, H, W = inputs.shape
    HW = H * W

    if HW % 128 == 0:
        lanes, S = 128, HW // 128
    else:
        # TODO(synk): HW not divisible by 128 falls back to a single untiled
        # (C, 1, HW) block per batch element; fine for small images, a large
        # ragged HW would want a 128-lane main block plus a remainder block.
        lanes, S = HW, 1

    # Free, contiguous reshapes: no transpose, no pad, no dtype cast in HBM.
    score = inputs.reshape(N, C, S, lanes)
    tgt = target.reshape(N, 1, S, lanes)          # native dtype, cast in-kernel

    vmem_limit = _vmem_limit_bytes()
    if tile_s is None:
        tile_s = _choose_tile_s(C, S, lanes, jnp.dtype(score.dtype).itemsize,
                                jnp.dtype(tgt.dtype).itemsize, vmem_limit // 2)
    else:
        tile_s = int(tile_s)
        tile_s = S if tile_s >= S else max(8, (tile_s // 8) * 8)

    grid_s = pl.cdiv(S, tile_s)
    ragged_s = (S % tile_s) != 0
    single_step = grid_s == 1

    kernel = functools.partial(
        _dice_partials_kernel,
        apply_softmax=bool(softmax),
        total_s=S,
        ragged_s=ragged_s,
        single_step=single_step,
    )

    part_i, part_zy = pl.pallas_call(
        kernel,
        out_shape=(jax.ShapeDtypeStruct((N, C, lanes), jnp.float32),
                   jax.ShapeDtypeStruct((N, C, lanes), jnp.float32)),
        grid_spec=pltpu.PrefetchScalarGridSpec(
            num_scalar_prefetch=0,
            grid=(N, grid_s),
            in_specs=[
                pl.BlockSpec((None, C, tile_s, lanes), lambda n, m: (n, 0, m, 0)),
                pl.BlockSpec((None, 1, tile_s, lanes), lambda n, m: (n, 0, m, 0)),
            ],
            out_specs=[
                pl.BlockSpec((None, C, lanes), lambda n, m: (n, 0, 0)),
                pl.BlockSpec((None, C, lanes), lambda n, m: (n, 0, 0)),
            ],
        ),
        compiler_params=pltpu.CompilerParams(
            dimension_semantics=("parallel", "arbitrary"),
            vmem_limit_bytes=vmem_limit),
    )(score, tgt)

    # TODO(synk): on v7x with N == 1 the batch-parallel axis leaves one
    # TensorCore idle; a leading size-2 split of the S range (its partial rows
    # summed right here) would fill it.
    intersect = jnp.sum(part_i, axis=(0, 2))      # (C,)
    zy_sum = jnp.sum(part_zy, axis=(0, 2))        # (C,) == z_sum + y_sum
    dice = 1.0 - (2.0 * intersect + _SMOOTH) / (zy_sum + _SMOOTH)
    if weight is None:
        w = jnp.ones((C,), jnp.float32)
    else:
        w = jnp.asarray(weight, jnp.float32).reshape(C)
    return jnp.sum(dice * w) / float(C)


def dice_loss_ref(inputs, target, weight=None, softmax=False):
    """Pure-JAX reference reproducing the PyTorch DiceLoss.forward."""
    C = inputs.shape[1]
    inputs = inputs.astype(jnp.float32)
    if softmax:
        inputs = jax.nn.softmax(inputs, axis=1)
    onehot = (target[:, None, :, :] ==
              jnp.arange(C)[None, :, None, None]).astype(jnp.float32)
    if weight is None:
        weight = [1.0] * C
    loss = 0.0
    smooth = 1e-05
    for i in range(C):
        s = inputs[:, i]
        t = onehot[:, i]
        intersect = jnp.sum(s * t)
        y_sum = jnp.sum(t * t)
        z_sum = jnp.sum(s * s)
        dice = 1.0 - (2.0 * intersect + smooth) / (z_sum + y_sum + smooth)
        loss = loss + dice * weight[i]
    return loss / C


if __name__ == "__main__":
    key = jax.random.PRNGKey(0)
    k1, k2, k3, k4, k5, k6 = jax.random.split(key, 6)

    # Case 1/2: batch=2, classes=4, 16x16 (HW=256 -> (S=2, L=128) single-shot).
    n_classes = 4
    inputs = jax.random.normal(k1, (2, n_classes, 16, 16), dtype=jnp.float32)
    target = jax.random.randint(k2, (2, 16, 16), 0, n_classes, dtype=jnp.int32)

    out0 = jax.block_until_ready(dice_loss_pallas(inputs, target, softmax=False))
    ref0 = dice_loss_ref(inputs, target, softmax=False)
    assert jnp.allclose(out0, ref0, rtol=1e-5, atol=1e-6), (out0, ref0)

    out1 = jax.block_until_ready(dice_loss_pallas(inputs, target, softmax=True))
    ref1 = dice_loss_ref(inputs, target, softmax=True)
    assert jnp.allclose(out1, ref1, rtol=1e-5, atol=1e-6), (out1, ref1)

    # Case 3: HW=576 not a multiple of 128 -> untiled (C, 1, 576) fallback,
    # class weights, C=3, softmax on.
    inputs3 = jax.random.normal(k3, (2, 3, 24, 24), dtype=jnp.float32)
    target3 = jax.random.randint(k4, (2, 24, 24), 0, 3, dtype=jnp.int32)
    w3 = [0.5, 1.0, 2.0]
    out3 = jax.block_until_ready(
        dice_loss_pallas(inputs3, target3, weight=w3, softmax=True))
    ref3 = dice_loss_ref(inputs3, target3, weight=w3, softmax=True)
    assert jnp.allclose(out3, ref3, rtol=1e-5, atol=1e-6), (out3, ref3)

    # Case 4: multi-step accumulation with a ragged last S-tile
    # (40x48 -> HW=1920 -> S=15, forced tile_s=8 -> grid_s=2, last tile masked).
    inputs4 = jax.random.normal(k5, (2, 4, 40, 48), dtype=jnp.float32)
    target4 = jax.random.randint(k6, (2, 40, 48), 0, 4, dtype=jnp.int32)
    out4 = jax.block_until_ready(
        dice_loss_pallas(inputs4, target4, softmax=True, tile_s=8))
    ref4 = dice_loss_ref(inputs4, target4, softmax=True)
    assert jnp.allclose(out4, ref4, rtol=1e-5, atol=1e-6), (out4, ref4)

    print("KERNEL_OK")
</pallas_src>

<mosaic_0001>
module attributes {stable_mosaic.version = 11 : i64} {
  func.func @_dice_partials_kernel(%arg0: i32, %arg1: i32, %arg2: memref<1x4x2x128xf32, #tpu.memory_space<vmem>>, %arg3: memref<1x1x2x128xi32, #tpu.memory_space<vmem>>, %arg4: memref<1x4x128xf32, #tpu.memory_space<vmem>>, %arg5: memref<1x4x128xf32, #tpu.memory_space<vmem>>) attributes {dimension_semantics = [#tpu.dimension_semantics<parallel>, #tpu.dimension_semantics<arbitrary>], iteration_bounds = array<i64: 2, 1>, scalar_prefetch = 0 : i64, scratch_operands = 0 : i64, tpu.core_type = #tpu.core_type<tc>, window_params = [{transform_indices = @transform_0, window_bounds = array<i64: 1, 4, 2, 128>}, {transform_indices = @transform_1, window_bounds = array<i64: 1, 1, 2, 128>}, {transform_indices = @transform_2, window_bounds = array<i64: 1, 4, 128>}, {transform_indices = @transform_3, window_bounds = array<i64: 1, 4, 128>}]} {
    %c0 = arith.constant 0 : index
    %c0_0 = arith.constant 0 : index
    %c0_1 = arith.constant 0 : index
    %c0_2 = arith.constant 0 : index
    %0 = vector.load %arg2[%c0, %c0_0, %c0_1, %c0_2] : memref<1x4x2x128xf32, #tpu.memory_space<vmem>>, vector<1x4x2x128xf32>
    %1 = vector.shape_cast %0 : vector<1x4x2x128xf32> to vector<4x2x128xf32>
    %c0_3 = arith.constant 0 : index
    %c0_4 = arith.constant 0 : index
    %c0_5 = arith.constant 0 : index
    %c0_6 = arith.constant 0 : index
    %2 = vector.load %arg3[%c0_3, %c0_4, %c0_5, %c0_6] : memref<1x1x2x128xi32, #tpu.memory_space<vmem>>, vector<1x1x2x128xi32>
    %3 = vector.shape_cast %2 : vector<1x1x2x128xi32> to vector<2x128xi32>
    %4 = vector.extract_strided_slice %1 {offsets = [0, 0, 0], sizes = [1, 2, 128], strides = [1, 1, 1]} : vector<4x2x128xf32> to vector<1x2x128xf32>
    %5 = vector.shape_cast %4 : vector<1x2x128xf32> to vector<2x128xf32>
    %c0_i32 = arith.constant 0 : i32
    %6 = vector.broadcast %c0_i32 : i32 to vector<2x128xi32>
    %7 = arith.cmpi eq, %3, %6 : vector<2x128xi32>
    %8 = arith.extui %7 : vector<2x128xi1> to vector<2x128xi32>
    %9 = arith.sitofp %8 : vector<2x128xi32> to vector<2x128xf32>
    %10 = arith.mulf %5, %9 : vector<2x128xf32>
    %cst = arith.constant dense<0.000000e+00> : vector<128xf32>
    %11 = vector.multi_reduction <add>, %10, %cst [0] : vector<2x128xf32> to vector<128xf32>
    %12 = vector.shape_cast %11 : vector<128xf32> to vector<1x128xf32>
    %13 = arith.mulf %5, %5 : vector<2x128xf32>
    %14 = arith.addf %13, %9 : vector<2x128xf32>
    %cst_7 = arith.constant dense<0.000000e+00> : vector<128xf32>
    %15 = vector.multi_reduction <add>, %14, %cst_7 [0] : vector<2x128xf32> to vector<128xf32>
    %16 = vector.shape_cast %15 : vector<128xf32> to vector<1x128xf32>
    %c0_8 = arith.constant 0 : index
    %c0_9 = arith.constant 0 : index
    %c0_10 = arith.constant 0 : index
    %17 = vector.load %arg4[%c0_8, %c0_9, %c0_10] : memref<1x4x128xf32, #tpu.memory_space<vmem>>, vector<1x1x128xf32>
    %18 = vector.shape_cast %17 : vector<1x1x128xf32> to vector<1x128xf32>
    %19 = vector.shape_cast %12 : vector<1x128xf32> to vector<1x1x128xf32>
    tpu.vector_store %arg4[%c0_8, %c0_9, %c0_10], %19 {strides = array<i32>} : memref<1x4x128xf32, #tpu.memory_space<vmem>>, vector<1x1x128xf32>,
    %c0_11 = arith.constant 0 : index
    %c0_12 = arith.constant 0 : index
    %c0_13 = arith.constant 0 : index
    %20 = vector.load %arg5[%c0_11, %c0_12, %c0_13] : memref<1x4x128xf32, #tpu.memory_space<vmem>>, vector<1x1x128xf32>
    %21 = vector.shape_cast %20 : vector<1x1x128xf32> to vector<1x128xf32>
    %22 = vector.shape_cast %16 : vector<1x128xf32> to vector<1x1x128xf32>
    tpu.vector_store %arg5[%c0_11, %c0_12, %c0_13], %22 {strides = array<i32>} : memref<1x4x128xf32, #tpu.memory_space<vmem>>, vector<1x1x128xf32>,
    %23 = vector.extract_strided_slice %1 {offsets = [1, 0, 0], sizes = [1, 2, 128], strides = [1, 1, 1]} : vector<4x2x128xf32> to vector<1x2x128xf32>
    %24 = vector.shape_cast %23 : vector<1x2x128xf32> to vector<2x128xf32>
    %c1_i32 = arith.constant 1 : i32
    %25 = vector.broadcast %c1_i32 : i32 to vector<2x128xi32>
    %26 = arith.cmpi eq, %3, %25 : vector<2x128xi32>
    %27 = arith.extui %26 : vector<2x128xi1> to vector<2x128xi32>
    %28 = arith.sitofp %27 : vector<2x128xi32> to vector<2x128xf32>
    %29 = arith.mulf %24, %28 : vector<2x128xf32>
    %cst_14 = arith.constant dense<0.000000e+00> : vector<128xf32>
    %30 = vector.multi_reduction <add>, %29, %cst_14 [0] : vector<2x128xf32> to vector<128xf32>
    %31 = vector.shape_cast %30 : vector<128xf32> to vector<1x128xf32>
    %32 = arith.mulf %24, %24 : vector<2x128xf32>
    %33 = arith.addf %32, %28 : vector<2x128xf32>
    %cst_15 = arith.constant dense<0.000000e+00> : vector<128xf32>
    %34 = vector.multi_reduction <add>, %33, %cst_15 [0] : vector<2x128xf32> to vector<128xf32>
    %35 = vector.shape_cast %34 : vector<128xf32> to vector<1x128xf32>
    %c0_16 = arith.constant 0 : index
    %c1 = arith.constant 1 : index
    %c0_17 = arith.constant 0 : index
    %36 = vector.load %arg4[%c0_16, %c1, %c0_17] : memref<1x4x128xf32, #tpu.memory_space<vmem>>, vector<1x1x128xf32>
    %37 = vector.shape_cast %36 : vector<1x1x128xf32> to vector<1x128xf32>
    %38 = vector.shape_cast %31 : vector<1x128xf32> to vector<1x1x128xf32>
    tpu.vector_store %arg4[%c0_16, %c1, %c0_17], %38 {strides = array<i32>} : memref<1x4x128xf32, #tpu.memory_space<vmem>>, vector<1x1x128xf32>,
    %c0_18 = arith.constant 0 : index
    %c1_19 = arith.constant 1 : index
    %c0_20 = arith.constant 0 : index
    %39 = vector.load %arg5[%c0_18, %c1_19, %c0_20] : memref<1x4x128xf32, #tpu.memory_space<vmem>>, vector<1x1x128xf32>
    %40 = vector.shape_cast %39 : vector<1x1x128xf32> to vector<1x128xf32>
    %41 = vector.shape_cast %35 : vector<1x128xf32> to vector<1x1x128xf32>
    tpu.vector_store %arg5[%c0_18, %c1_19, %c0_20], %41 {strides = array<i32>} : memref<1x4x128xf32, #tpu.memory_space<vmem>>, vector<1x1x128xf32>,
    %42 = vector.extract_strided_slice %1 {offsets = [2, 0, 0], sizes = [1, 2, 128], strides = [1, 1, 1]} : vector<4x2x128xf32> to vector<1x2x128xf32>
    %43 = vector.shape_cast %42 : vector<1x2x128xf32> to vector<2x128xf32>
    %c2_i32 = arith.constant 2 : i32
    %44 = vector.broadcast %c2_i32 : i32 to vector<2x128xi32>
    %45 = arith.cmpi eq, %3, %44 : vector<2x128xi32>
    %46 = arith.extui %45 : vector<2x128xi1> to vector<2x128xi32>
    %47 = arith.sitofp %46 : vector<2x128xi32> to vector<2x128xf32>
    %48 = arith.mulf %43, %47 : vector<2x128xf32>
    %cst_21 = arith.constant dense<0.000000e+00> : vector<128xf32>
    %49 = vector.multi_reduction <add>, %48, %cst_21 [0] : vector<2x128xf32> to vector<128xf32>
    %50 = vector.shape_cast %49 : vector<128xf32> to vector<1x128xf32>
    %51 = arith.mulf %43, %43 : vector<2x128xf32>
    %52 = arith.addf %51, %47 : vector<2x128xf32>
    %cst_22 = arith.constant dense<0.000000e+00> : vector<128xf32>
    %53 = vector.multi_reduction <add>, %52, %cst_22 [0] : vector<2x128xf32> to vector<128xf32>
    %54 = vector.shape_cast %53 : vector<128xf32> to vector<1x128xf32>
    %c0_23 = arith.constant 0 : index
    %c2 = arith.constant 2 : index
    %c0_24 = arith.constant 0 : index
    %55 = vector.load %arg4[%c0_23, %c2, %c0_24] : memref<1x4x128xf32, #tpu.memory_space<vmem>>, vector<1x1x128xf32>
    %56 = vector.shape_cast %55 : vector<1x1x128xf32> to vector<1x128xf32>
    %57 = vector.shape_cast %50 : vector<1x128xf32> to vector<1x1x128xf32>
    tpu.vector_store %arg4[%c0_23, %c2, %c0_24], %57 {strides = array<i32>} : memref<1x4x128xf32, #tpu.memory_space<vmem>>, vector<1x1x128xf32>,
    %c0_25 = arith.constant 0 : index
    %c2_26 = arith.constant 2 : index
    %c0_27 = arith.constant 0 : index
    %58 = vector.load %arg5[%c0_25, %c2_26, %c0_27] : memref<1x4x128xf32, #tpu.memory_space<vmem>>, vector<1x1x128xf32>
    %59 = vector.shape_cast %58 : vector<1x1x128xf32> to vector<1x128xf32>
    %60 = vector.shape_cast %54 : vector<1x128xf32> to vector<1x1x128xf32>
    tpu.vector_store %arg5[%c0_25, %c2_26, %c0_27], %60 {strides = array<i32>} : memref<1x4x128xf32, #tpu.memory_space<vmem>>, vector<1x1x128xf32>,
    %61 = vector.extract_strided_slice %1 {offsets = [3, 0, 0], sizes = [1, 2, 128], strides = [1, 1, 1]} : vector<4x2x128xf32> to vector<1x2x128xf32>
    %62 = vector.shape_cast %61 : vector<1x2x128xf32> to vector<2x128xf32>
    %c3_i32 = arith.constant 3 : i32
    %63 = vector.broadcast %c3_i32 : i32 to vector<2x128xi32>
    %64 = arith.cmpi eq, %3, %63 : vector<2x128xi32>
    %65 = arith.extui %64 : vector<2x128xi1> to vector<2x128xi32>
    %66 = arith.sitofp %65 : vector<2x128xi32> to vector<2x128xf32>
    %67 = arith.mulf %62, %66 : vector<2x128xf32>
    %cst_28 = arith.constant dense<0.000000e+00> : vector<128xf32>
    %68 = vector.multi_reduction <add>, %67, %cst_28 [0] : vector<2x128xf32> to vector<128xf32>
    %69 = vector.shape_cast %68 : vector<128xf32> to vector<1x128xf32>
    %70 = arith.mulf %62, %62 : vector<2x128xf32>
    %71 = arith.addf %70, %66 : vector<2x128xf32>
    %cst_29 = arith.constant dense<0.000000e+00> : vector<128xf32>
    %72 = vector.multi_reduction <add>, %71, %cst_29 [0] : vector<2x128xf32> to vector<128xf32>
    %73 = vector.shape_cast %72 : vector<128xf32> to vector<1x128xf32>
    %c0_30 = arith.constant 0 : index
    %c3 = arith.constant 3 : index
    %c0_31 = arith.constant 0 : index
    %74 = vector.load %arg4[%c0_30, %c3, %c0_31] : memref<1x4x128xf32, #tpu.memory_space<vmem>>, vector<1x1x128xf32>
    %75 = vector.shape_cast %74 : vector<1x1x128xf32> to vector<1x128xf32>
    %76 = vector.shape_cast %69 : vector<1x128xf32> to vector<1x1x128xf32>
    tpu.vector_store %arg4[%c0_30, %c3, %c0_31], %76 {strides = array<i32>} : memref<1x4x128xf32, #tpu.memory_space<vmem>>, vector<1x1x128xf32>,
    %c0_32 = arith.constant 0 : index
    %c3_33 = arith.constant 3 : index
    %c0_34 = arith.constant 0 : index
    %77 = vector.load %arg5[%c0_32, %c3_33, %c0_34] : memref<1x4x128xf32, #tpu.memory_space<vmem>>, vector<1x1x128xf32>
    %78 = vector.shape_cast %77 : vector<1x1x128xf32> to vector<1x128xf32>
    %79 = vector.shape_cast %73 : vector<1x128xf32> to vector<1x1x128xf32>
    tpu.vector_store %arg5[%c0_32, %c3_33, %c0_34], %79 {strides = array<i32>} : memref<1x4x128xf32, #tpu.memory_space<vmem>>, vector<1x1x128xf32>,
    return
  }
  func.func @transform_0(%arg0: i32, %arg1: i32) -> (i32, i32, i32, i32) {
    %c0_i32 = arith.constant 0 : i32
    %c0_i32_0 = arith.constant 0 : i32
    %c0_i32_1 = arith.constant 0 : i32
    return %arg0, %c0_i32, %arg1, %c0_i32_0 : i32, i32, i32, i32
  }
  func.func @transform_1(%arg0: i32, %arg1: i32) -> (i32, i32, i32, i32) {
    %c0_i32 = arith.constant 0 : i32
    %c0_i32_0 = arith.constant 0 : i32
    %c0_i32_1 = arith.constant 0 : i32
    return %arg0, %c0_i32, %arg1, %c0_i32_0 : i32, i32, i32, i32
  }
  func.func @transform_2(%arg0: i32, %arg1: i32) -> (i32, i32, i32) {
    %c0_i32 = arith.constant 0 : i32
    %c0_i32_0 = arith.constant 0 : i32
    %c0_i32_1 = arith.constant 0 : i32
    return %arg0, %c0_i32, %c0_i32_0 : i32, i32, i32
  }
  func.func @transform_3(%arg0: i32, %arg1: i32) -> (i32, i32, i32) {
    %c0_i32 = arith.constant 0 : i32
    %c0_i32_0 = arith.constant 0 : i32
    %c0_i32_1 = arith.constant 0 : i32
    return %arg0, %c0_i32, %c0_i32_0 : i32, i32, i32
  }
}

</mosaic_0001>

<bundles_post_ra>
// kernel: tpu_custom_call.1
= control target key start
LH: loop header
LB: loop body
LE: loop exit
PB: predicated region body
PF: predicated region fallthrough
CT: control target
= control target key end

     0   :  { %9 = vsyncpa [#allocation3], 0  ;;  %s997_s0 = inlined_call_operand.hbm [shape: f32[2,4,2,128], index: 0, kind: input, shape index: {}]   ;;  %s998_s1 = inlined_call_operand.hbm [shape: s32[2,1,2,128], index: 1, kind: input, shape index: {}]   ;;  %s999_s2 = inlined_call_operand.hbm [shape: f32[2,4,128], index: 2, kind: output, shape index: {0}]   ;;  %s1000_s3 = inlined_call_operand.hbm [shape: f32[2,4,128], index: 3, kind: output, shape index: {1}]  }
   0x1   :  { %11 = vsyncpa [#allocation3 + $0x1], 0 }
   0x2   :  { %12 = vsyncpa [#allocation6], 0 }
   0x3   :  { %14 = vsyncpa [#allocation6 + $0x1], 0 }
   0x4   :  { %15 = vsyncpa [#allocation4], 0 }
   0x5   :  { %17 = vsyncpa [#allocation4 + $0x1], 0 }
   0x6   :  { %18 = vsyncpa [#allocation9], 0 }
   0x7   :  { %20 = vsyncpa [#allocation9 + $0x1], 0  ;;  %s825_s12 = smov 0   ;;  %s827_s13 = smov 0  }
   0x8   :  { %s829_s14 = smov 0   ;;  %s831_s15 = smov 0  }
   0x9   :  { %s833_s16 = smov 0   ;;  %s835_s17 = smov 0  }
   0xa LB: > { %s522_s18 = sadd.s32 4294967295, %s800_s17   ;;  %s523_s19 = sadd.s32 4294967294, %s800_s17   ;;  %s800_s17 = sphi %s835_s17, %s26_s17   ;;  %s796_s16 = sphi %s833_s16, %s1010_s16   ;;  %s792_s15 = sphi %s831_s15, %s1009_s15   ;;  %s788_s14 = sphi %s829_s14, %s1008_s14   ;;  %s784_s13 = sphi %s827_s13, %s1007_s13   ;;  %s780_s12 = sphi %s825_s12, %s1006_s12  }
   0xb   : > { %s38_s20 = sadd.s32 1, %s796_s16  ;;  %s47_s21 = sadd.s32 1, %s788_s14 }
   0xc   : > { %p40_p0 = scmp.ge.s32.totalorder %s38_s20, 2  ;;  %p54_p1 = scmp.ne.s32.totalorder %s788_s14, %s784_s13 }
   0xd   : > { %p55_p2 = scmp.eq.s32.totalorder %s800_s17, 0  ;;  %p60_p3 = scmp.ne.s32.totalorder %s784_s13, %s780_s12 }
   0xe   : > { %s1012_s20 = smov (%p40_p0, %s38_s20), 0  ;;  %p61_p5 = scmp.eq.s32.totalorder %s522_s18, 0 }
   0xf   : > { %p866_p4 = por %p55_p2, %p54_p1  ;;  %s42_s23 = ssub.s32 %s796_s16, %s1012_s20 }
  0x10   : > { %p112_p6 = scmp.eq.s32.totalorder %s522_s18, 1  ;;  %p45_p7 = scmp.eq.s32.totalorder %s42_s23, 0 }
  0x11   : > { %p872_p8 = por %p61_p5, %p60_p3  ;;  %p118_p10 = scmp.eq.s32.totalorder %s523_s19, 1 }
  0x12   : > { %p876_p9 = por %p112_p6, %p54_p1  ;;  %p525_p12 = scmp.ge.s32.totalorder %s800_s17, 2 }
  0x13   : > { %s881_s26 = scalar_select %p45_p7, %s788_s14, %s47_s21  }
  0x14   : > { %p883_p11 = por %p118_p10, %p60_p3  ;;  %p569_p13 = scmp.lt.s32.totalorder %s800_s17, 2 }
  0x15   : > { %s164_s28 = sand.u32 1, %s788_s14   ;;  %s546_s30 = sshll.u32 %s796_s16, 3 }
  0x16   : > { %s526_s29 = sshll.u32 %s164_s28, 3  ;;  %s174_s6 = scalar_lea.hbm %s997_s0, %s546_s30 }
  0x17   : > { %s168_s7 = scalar_lea.vmem [#allocation2], %s526_s29  ;;  %s175_s9 = sshll.u32 %s174_s6, 4  ;;  %s176_s9 = int_to_ptr.hbm [resolvable:$true] %s175_s9 }
  0x18   : > { %s177_s8 = sshll.u32 %s168_s7, 4  ;;  %p896_p0 = pnand %p569_p13, %p866_p4  ;;  %s178_s8 = int_to_ptr.vmem [resolvable:$true] %s177_s8 }
  0x19   : > { %p531_p1 = scmp.ge.s32.totalorder %s800_s17, 1  ;;  %s165_s11 = scalar_lea.sflag [#allocation3], %s164_s28 }
  0x1a   : > { %s802_s18 = smov 32   ;;  %s803_s19 = smov 2  }
  0x1b   : > { %558 = dma.hbm_to_vmem [thread:$0]  (!%p896_p0), %s176_s9, 128, %s178_s8, %s165_s11, %s802_s18, %s802_s18, %s803_s19  }
  0x1c   : > { %p205_p2 = scmp.lt.s32.totalorder %s800_s17, 3  ;;  %s529_s21 = sshll.u32 %s164_s28, 1 }
  0x1d   : > { %s530_s23 = sshll.u32 %s796_s16, 1  ;;  %s191_s4 = scalar_lea.vmem [#allocation5], %s529_s21 }
  0x1e   : > { %p206_p3 = pnand %p531_p1, %p205_p2  ;;  %s196_s22 = scalar_lea.hbm %s998_s1, %s530_s23 }
  0x1f   : > { %s200_s5 = sshll.u32 %s191_s4, 4  ;;  %s198_s6 = sshll.u32 %s196_s22, 4  ;;  %s201_s5 = int_to_ptr.vmem [resolvable:$true] %s200_s5  ;;  %s199_s6 = int_to_ptr.hbm [resolvable:$true] %s198_s6 }
  0x20   : > { %s188_s7 = scalar_lea.sflag [#allocation6], %s164_s28  ;;  %209 = sbr.rel (%p206_p3) target bundleno = 82 (0x52), region = 28 }
  0x21   : > { %561 = dma.hbm_to_vmem [thread:$0]  (!%p896_p0), %s199_s6, 32, %s201_s5, %s188_s7  }
  0x22   : > { %s911_s8 = sand.u32 (!%p206_p3), 1, %s784_s13  }
  0x23   : > { %s532_s9 = sshll.u32 (!%p206_p3), %s911_s8, 3  ;;  %s212_s11 = scalar_lea.sflag (!%p206_p3), [#allocation3], %s911_s8 }
  0x24   : > { %s215_s18 = scalar_lea.vmem (!%p206_p3), [#allocation2], %s532_s9 }
  0x25   : > { %763 = dma.done.wait (%p872_p8), %s212_s11, 128  }
  0x26   : > { %765 = vsyncadd (%p872_p8), %s212_s11, 4294967168  ;;  %s533_s28 = sshll.u32 %s911_s8, 1  ;;  %s222_s10 = scalar_lea.sflag [#allocation6], %s911_s8 }
  0x27   : > { %s225_s19 = scalar_lea.vmem [#allocation5], %s533_s28 }
  0x28   : > { %767 = dma.done.wait (%p872_p8), %s222_s10, 32  }
  0x29   : > { %769 = vsyncadd (%p872_p8), %s222_s10, 4294967264  ;;  %vm268_vm0 = vcmask 1041408   ;;  %v259_v0 = vld [vmem:[%s215_s18] sm:$0x3]  ;;  %v263_v1 = vld [vmem:[%s225_s19] sm:$0x3] }
  0x2a   : > { %v260_v2 = vld [vmem:[%s215_s18 + $0x2] sm:$0x3]  ;;  %vm264_vm1 = vcmp.eq.s32.totalorder %v263_v1, 0  ;;  %v276_v3 = vmul.f32 %v259_v0, %v259_v0  ;;  %vm287_vm2 = vcmp.eq.s32.totalorder %v263_v1, 1  ;;  %v261_v5 = vld [vmem:[%s215_s18 + $0x4] sm:$0x3] }
  0x2b   : > { %v298_v4 = vmul.f32 %v260_v2, %v260_v2  ;;  %v262_v6 = vld [vmem:[%s215_s18 + $0x6] sm:$0x3]  ;;  %v804_v7 = vmov 0.0   ;;  %vm309_vm3 = vcmp.eq.s32.totalorder %v263_v1, 2  ;;  %v320_v10 = vmul.f32 %v261_v5, %v261_v5  ;;  %s534_s24 = sshll.u32 %s911_s8, 2  ;;  %s542_s21 = sshll.u32 %s792_s15, 2 }
  0x2c   : > { %v536_v8 = vsel %vm264_vm1, 1.0, %v804_v7  ;;  %v537_v9 = vsel %vm287_vm2, 1.0, %v804_v7  ;;  %v538_v15 = vsel %vm309_vm3, 1.0, %v804_v7  ;;  %vm331_vm4 = vcmp.eq.s32.totalorder %v263_v1, 3  ;;  %s369_s30 = scalar_lea.hbm %s999_s2, %s542_s21  ;;  %s251_s22 = scalar_lea.vmem [#allocation7], %s534_s24 }
  0x2d   : > { %v267_v11 = vmul.f32 %v536_v8, %v259_v0  ;;  %v277_v12 = vadd.f32 %v536_v8, %v276_v3  ;;  %v290_v13 = vmul.f32 %v537_v9, %v260_v2  ;;  %v299_v14 = vadd.f32 %v537_v9, %v298_v4  ;;  %s383_s5 = scalar_lea.hbm %s1000_s3, %s542_s21  ;;  %s371_s6 = sshll.u32 %s251_s22, 4  ;;  %s372_s6 = int_to_ptr.vmem [resolvable:$true] %s371_s6 }
  0x2e   : > { %v342_v16 = vmul.f32 %v262_v6, %v262_v6  ;;  %v312_v25 = vmul.f32 %v538_v15, %v261_v5  ;;  %v321_v26 = vadd.f32 %v538_v15, %v320_v10  ;;  %v539_v27 = vsel %vm331_vm4, 1.0, %v804_v7  ;;  %s258_s7 = scalar_lea.vmem [#allocation8], %s534_s24  ;;  %s373_s11 = sshll.u32 %s369_s30, 4  ;;  %s374_s11 = int_to_ptr.hbm [resolvable:$true] %s373_s11 }
  0x2f   : > { %v269_v17 = vsel %vm268_vm0, %v267_v11, 0.0  ;;  %v278_v18 = vsel %vm268_vm0, %v277_v12, 0.0  ;;  %v291_v19 = vsel %vm268_vm0, %v290_v13, 0.0  ;;  %v300_v20 = vsel %vm268_vm0, %v299_v14, 0.0  ;;  %s385_s9 = sshll.u32 %s258_s7, 4  ;;  %s387_s18 = sshll.u32 %s383_s5, 4  ;;  %s945_s9 = int_to_ptr.vmem [resolvable:$true] %s385_s9  ;;  %s947_s18 = int_to_ptr.hbm [resolvable:$true] %s387_s18 }
  0x30   : > { %v270_v21 = vrot.slane %v269_v17, 4  ;;  %v279_v22 = vrot.slane %v278_v18, 4  ;;  %v292_v23 = vrot.slane %v291_v19, 4  ;;  %v301_v24 = vrot.slane %v300_v20, 4  ;;  %s354_s28 = scalar_lea.sflag [#allocation4], %s911_s8  ;;  %s696_s10 = sshra.s32 %s374_s11, 4  ;;  %s697_s10 = int_to_ptr.hbm [resolvable:$true] %s696_s10 }
  0x31   : > { %v313_v32 = vsel %vm268_vm0, %v312_v25, 0.0  ;;  %v322_v33 = vsel %vm268_vm0, %v321_v26, 0.0  ;;  %v334_v34 = vmul.f32 %v539_v27, %v262_v6  ;;  %v343_v35 = vadd.f32 %v539_v27, %v342_v16  ;;  %s698_s19 = scalar_lea.hbm %s697_s10, 4  ;;  %s702_s23 = scalar_lea.hbm %s999_s2, 8 }
  0x32   : > { %v271_v28 = vadd.f32 %v270_v21, %v269_v17  ;;  %v280_v29 = vadd.f32 %v279_v22, %v278_v18  ;;  %v293_v30 = vadd.f32 %v292_v23, %v291_v19  ;;  %v302_v31 = vadd.f32 %v301_v24, %v300_v20  ;;  %p699_p4 = scmp.ne.s32.totalorder %s697_s10, %s698_s19  ;;  %p703_p7 = scmp.lt.s32.totalorder %s697_s10, %s999_s2 }
  0x33   : > { %v314_v40 = vrot.slane %v313_v32, 4  ;;  %v323_v41 = vrot.slane %v322_v33, 4  ;;  %v335_v42 = vsel %vm268_vm0, %v334_v34, 0.0  ;;  %v344_v43 = vsel %vm268_vm0, %v343_v35, 0.0  ;;  %p704_p8 = scmp.lt.s32.totalorder %s702_s23, %s698_s19 }
  0x34   : > { %v272_v36 = vrot.slane %v271_v28, 2  ;;  %v281_v37 = vrot.slane %v280_v29, 2  ;;  %v294_v38 = vrot.slane %v293_v30, 2  ;;  %v303_v39 = vrot.slane %v302_v31, 2  ;;  %p700_p5 = pnand %p699_p4, %p876_p9 }
  0x35   : > { %v315_v48 = vadd.f32 %v314_v40, %v313_v32  ;;  %v324_v49 = vadd.f32 %v323_v41, %v322_v33  ;;  %v336_v50 = vrot.slane %v335_v42, 4  ;;  %v345_v51 = vrot.slane %v344_v43, 4  ;;  %p705_p10 = por %p704_p8, %p703_p7 }
  0x36   : > { %v273_v44 = vadd.f32 %v272_v36, %v271_v28  ;;  %v282_v45 = vadd.f32 %v281_v37, %v280_v29  ;;  %v295_v46 = vadd.f32 %v294_v38, %v293_v30  ;;  %v304_v47 = vadd.f32 %v303_v39, %v302_v31  ;;  %p701_p6 = pneg %p700_p5 }
  0x37   : > { %v316_v56 = vrot.slane %v315_v48, 2  ;;  %v325_v57 = vrot.slane %v324_v49, 2  ;;  %v337_v58 = vadd.f32 %v336_v50, %v335_v42  ;;  %v346_v59 = vadd.f32 %v345_v51, %v344_v43 }
  0x38   : > { %v274_v52 = vrot.slane %v273_v44, 1  ;;  %v283_v53 = vrot.slane %v282_v45, 1  ;;  %v296_v54 = vrot.slane %v295_v46, 1  ;;  %v305_v55 = vrot.slane %v304_v47, 1  ;;  %p706_p13 = pnand %p705_p10, %p701_p6 }
  0x39   : > { %v317_v0 = vadd.f32 %v316_v56, %v315_v48  ;;  %v326_v1 = vadd.f32 %v325_v57, %v324_v49  ;;  %v338_v2 = vrot.slane %v337_v58, 2  ;;  %v347_v3 = vrot.slane %v346_v59, 2 }
  0x3a   : > { %v275_v60 = vadd.f32 %v274_v52, %v273_v44  ;;  %v284_v61 = vadd.f32 %v283_v53, %v282_v45  ;;  %v297_v62 = vadd.f32 %v296_v54, %v295_v46  ;;  %v306_v63 = vadd.f32 %v305_v55, %v304_v47 }
  0x3b   : > { %v318_v4 = vrot.slane %v317_v0, 1  ;;  %v327_v5 = vrot.slane %v326_v1, 1  ;;  %v339_v6 = vadd.f32 %v338_v2, %v337_v58  ;;  %v348_v7 = vadd.f32 %v347_v3, %v346_v59 }
  0x3c   : > { %285 = vst [vmem:[%s251_s22] sm:$0x1] %v275_v60 }
  0x3d   : > { %286 = vst [vmem:[%s258_s7] sm:$0x1] %v284_v61  ;;  %v319_v8 = vadd.f32 %v318_v4, %v317_v0  ;;  %v328_v9 = vadd.f32 %v327_v5, %v326_v1  ;;  %v340_v10 = vrot.slane %v339_v6, 1  ;;  %v349_v11 = vrot.slane %v348_v7, 1 }
  0x3e   : > { %307 = vst [vmem:[%s251_s22 + $0x1] sm:$0x1] %v297_v62 }
  0x3f   : > { %308 = vst [vmem:[%s258_s7 + $0x1] sm:$0x1] %v306_v63  ;;  %v341_v12 = vadd.f32 %v340_v10, %v339_v6  ;;  %v350_v13 = vadd.f32 %v349_v11, %v348_v7 }
  0x40   : > { %329 = vst [vmem:[%s251_s22 + $0x2] sm:$0x1] %v319_v8 }
  0x41   : > { %330 = vst [vmem:[%s258_s7 + $0x2] sm:$0x1] %v328_v9 }
  0x42   : > { %351 = vst [vmem:[%s251_s22 + $0x3] sm:$0x1] %v341_v12 }
  0x43   : > { %352 = vst [vmem:[%s258_s7 + $0x3] sm:$0x1] %v350_v13 }
  0x44   : > { %709 = shalt.err (!%p706_p13)
}
  0x45   : > { %551 = dma.vmem_to_hbm [thread:$0]  (%p876_p9), %s372_s6, 64, %s374_s11, %s354_s28  }
  0x46   : > { %s359_s22 = scalar_lea.sflag [#allocation9], %s911_s8  ;;  %s724_s15 = sshra.s32 %s947_s18, 4  ;;  %s725_s15 = int_to_ptr.hbm [resolvable:$true] %s724_s15 }
  0x47   : > { %s726_s4 = scalar_lea.hbm %s725_s15, 4  ;;  %s730_s10 = scalar_lea.hbm %s1000_s3, 8 }
  0x48   : > { %p727_p0 = scmp.ne.s32.totalorder %s725_s15, %s726_s4  ;;  %p731_p3 = scmp.lt.s32.totalorder %s725_s15, %s1000_s3 }
  0x49   : > { %p732_p4 = scmp.lt.s32.totalorder %s730_s10, %s726_s4 }
  0x4a   : > { %p728_p1 = pnand %p727_p0, %p876_p9 }
  0x4b   : > { %p733_p5 = por %p732_p4, %p731_p3 }
  0x4c   : > { %p729_p2 = pneg %p728_p1 }
  0x4e   : > { %p734_p6 = pnand %p733_p5, %p729_p2 }
  0x50   : > { %737 = shalt.err (!%p734_p6)
}
  0x51   : > { %552 = dma.vmem_to_hbm [thread:$0]  (%p876_p9), %s945_s9, 64, %s947_s18, %s359_s22  }
  0x52 PF: > { %s399_s8 = sand.u32 1, %s780_s12   ;;  %p563_p7 = pnand %p525_p12, %p883_p11 }
  0x53   : > { %s400_s6 = scalar_lea.sflag [#allocation4], %s399_s8 }
  0x54   : > { %p564_p8 = pneg %p563_p7 }
  0x56   : > { %771 = dma.done.wait (%p564_p8), %s400_s6, 64  }
  0x57   : > { %773 = vsyncadd (%p564_p8), %s400_s6, 4294967232  ;;  %s410_s11 = scalar_lea.sflag [#allocation9], %s399_s8 }
  0x58   : > { %775 = dma.done.wait (%p564_p8), %s410_s11, 64  }
  0x59   : > { %777 = vsyncadd (%p564_p8), %s410_s11, 4294967232  ;;  %s26_s17 = sadd.s32 1, %s800_s17   ;;  %s1006_s12 = smov %s784_s13 }
  0x5a   : > { %p23_p10 = scmp.ge.s32.totalorder %s26_s17, 4   ;;  %s1007_s13 = smov %s788_s14 }
  0x5b   : > { %s1008_s14 = smov %s881_s26  ;;  %s1009_s15 = smov %s796_s16 }
  0x5c   : > { %s1010_s16 = smov %s1012_s20  ;;  %25 = sbr.rel (!%p23_p10) target bundleno = 10 (0xa), region = 103 }
  0x61   :  { %416 = vsyncpa [#allocation3], 1 }
  0x62   :  { %418 = vsyncpa [#allocation3 + $0x1], 1 }
  0x63   :  { %419 = vsyncpa [#allocation6], 1 }
  0x64   :  { %421 = vsyncpa [#allocation6 + $0x1], 1 }
  0x65   :  { %422 = vsyncpa [#allocation4], 1 }
  0x66   :  { %424 = vsyncpa [#allocation4 + $0x1], 1 }
  0x67   :  { %425 = vsyncpa [#allocation9], 1 }
  0x68   :  { %427 = vsyncpa [#allocation9 + $0x1], 1 }

</bundles_post_ra>
